<compile_context>
chip_gen: v7x
topology: tpu7x:2x2x1
jax: 0.10.0
libtpu: 0.0.40
codegen_flags: <defaults>
</compile_context>

<pallas_src>
import jax
import jax.numpy as jnp
from jax.experimental import pallas as pl
from jax.experimental.pallas import tpu as pltpu


def _basic_block2_kernel(p_ref, w1_ref, b_ref, w2_ref, o_ref):
    # p_ref:  (9*Cin, Mt)   im2col patches (tap/channel-major rows, pixels on lanes)
    # w1_ref: (Cout, 9*Cin) 3x3 conv weights with BN scale folded in
    # b_ref:  (Cout, 1)     folded BN bias = beta - mean * gamma / sqrt(var + eps)
    # w2_ref: (Cout, Cout)  1x1 conv weight (out-ch on rows)
    # o_ref:  (Cout, Mt)
    h = jnp.dot(w1_ref[...], p_ref[...], preferred_element_type=jnp.float32)
    h = h + b_ref[...]                                    # folded BN bias
    h = jnp.where(h >= 0, h, jnp.float32(0.01) * h)        # LeakyReLU(0.01)
    o_ref[...] = jnp.dot(w2_ref[...], h,
                         preferred_element_type=jnp.float32).astype(o_ref.dtype)


def basic_block_2(x_nchw, w1, gamma, beta, run_mean, run_var, w2, eps=1e-5):
    """Forward of BasicBlock_2.  x_nchw: (N, Cin, H, W) f32. Returns (N, Cout, H, W)."""
    N, Cin, H, W = x_nchw.shape
    Cout = w1.shape[0]
    M = N * H * W
    K = 9 * Cin

    # ---- wrapper-side im2col (XLA): (9*Cin, N*H*W), pixels on the lane axis ----
    xp = jnp.pad(x_nchw, ((0, 0), (0, 0), (1, 1), (1, 1)))        # (N, Cin, H+2, W+2)
    cols = jnp.concatenate(
        [xp[:, :, dy:dy + H, dx:dx + W] for dy in range(3) for dx in range(3)],
        axis=1)                                                    # (N, 9*Cin, H, W)
    patches = jnp.transpose(cols, (1, 0, 2, 3)).reshape(K, M)      # (9*Cin, M)

    # ---- fold BN (inference) running stats into conv3x3 weights / a bias column ----
    scale = gamma / jnp.sqrt(run_var + eps)                        # (Cout,)
    # Torch conv3x3 weight (Cout, Cin, 3, 3) -> tap-major (Cout, 9*Cin),
    # matching the im2col tap ordering above.
    w1_flat = jnp.transpose(w1, (0, 2, 3, 1)).reshape(Cout, K)
    w1_s = w1_flat * scale[:, None]                                # scale folded in
    bias = (beta - run_mean * scale).reshape(Cout, 1)              # (Cout, 1)
    w2_m = w2[:, :, 0, 0]                                          # (Cout, Cout)

    # Split the M (pixel) axis into lane-dense tiles; 2 parallel tiles feed v7x's
    # two TensorCores.  (Everything here is tiny and fits VMEM with huge margin;
    # at real ResNet sizes add more M tiles and set vmem_limit_bytes.)
    if M % 256 == 0:
        n_tiles = 2
    else:
        n_tiles = 1
    MT = M // n_tiles

    out_t = pl.pallas_call(
        _basic_block2_kernel,
        out_shape=jax.ShapeDtypeStruct((Cout, M), jnp.float32),
        grid=(n_tiles,),
        in_specs=[
            pl.BlockSpec((K, MT), lambda i: (0, i)),        # patches: tile over M
            pl.BlockSpec((Cout, K), lambda i: (0, 0)),      # weights stay resident
            pl.BlockSpec((Cout, 1), lambda i: (0, 0)),
            pl.BlockSpec((Cout, Cout), lambda i: (0, 0)),
        ],
        out_specs=pl.BlockSpec((Cout, MT), lambda i: (0, i)),
        compiler_params=pltpu.CompilerParams(
            dimension_semantics=("parallel",)),
    )(patches, w1_s, bias, w2_m)

    # (Cout, N*H*W) -> (N, Cout, H, W)
    return jnp.transpose(out_t.reshape(Cout, N, H, W), (1, 0, 2, 3))


def _reference(x, w1, gamma, beta, run_mean, run_var, w2, eps=1e-5):
    """Pure-JAX (XLA conv) reference for correctness checking."""
    y = jax.lax.conv_general_dilated(
        x, w1, window_strides=(1, 1), padding=((1, 1), (1, 1)),
        dimension_numbers=("NCHW", "OIHW", "NCHW"))
    s = gamma / jnp.sqrt(run_var + eps)
    b = beta - run_mean * s
    y = y * s[None, :, None, None] + b[None, :, None, None]
    y = jnp.where(y >= 0, y, 0.01 * y)
    y = jax.lax.conv_general_dilated(
        y, w2, window_strides=(1, 1), padding=((0, 0), (0, 0)),
        dimension_numbers=("NCHW", "OIHW", "NCHW"))
    return y


if __name__ == "__main__":
    # Small, deterministic config: N=2, inplanes=4, planes=8, H=W=16.
    N, Cin, Cout, H, W = 2, 4, 8, 16, 16
    key = jax.random.PRNGKey(0)
    k_x, k_w1, k_g, k_b, k_m, k_v, k_w2 = jax.random.split(key, 7)

    x = jax.random.normal(k_x, (N, Cin, H, W), jnp.float32)
    w1 = jax.random.normal(k_w1, (Cout, Cin, 3, 3), jnp.float32) * 0.1
    gamma = 1.0 + 0.1 * jax.random.normal(k_g, (Cout,), jnp.float32)
    beta = 0.1 * jax.random.normal(k_b, (Cout,), jnp.float32)
    run_mean = 0.1 * jax.random.normal(k_m, (Cout,), jnp.float32)
    run_var = jnp.abs(jax.random.normal(k_v, (Cout,), jnp.float32)) + 0.5
    w2 = jax.random.normal(k_w2, (Cout, Cout, 1, 1), jnp.float32) * 0.1
    # TODO(synk): PyTorch BatchNorm2d defaults to training-mode batch stats; this
    # kernel implements the standard inference-mode BN with folded running stats.

    out = basic_block_2(x, w1, gamma, beta, run_mean, run_var, w2)
    out = jax.block_until_ready(out)

    ref = _reference(x, w1, gamma, beta, run_mean, run_var, w2)
    assert out.shape == (N, Cout, H, W)
    assert jnp.allclose(out, ref, atol=1e-4, rtol=1e-4)

    print("KERNEL_OK")
</pallas_src>

<mosaic_0001>
module attributes {stable_mosaic.version = 11 : i64} {
  func.func @_basic_block2_kernel(%arg0: i32, %arg1: memref<36x256xf32, #tpu.memory_space<vmem>>, %arg2: memref<8x36xf32, #tpu.memory_space<vmem>>, %arg3: memref<8x1xf32, #tpu.memory_space<vmem>>, %arg4: memref<8x8xf32, #tpu.memory_space<vmem>>, %arg5: memref<8x256xf32, #tpu.memory_space<vmem>>) attributes {dimension_semantics = [#tpu.dimension_semantics<parallel>], iteration_bounds = array<i64: 2>, scalar_prefetch = 0 : i64, scratch_operands = 0 : i64, tpu.core_type = #tpu.core_type<tc>, window_params = [{transform_indices = @transform_0, window_bounds = array<i64: 36, 256>}, {pipeline_mode = #tpu.pipeline_mode<synchronous>, transform_indices = @transform_1, window_bounds = array<i64: 8, 36>}, {pipeline_mode = #tpu.pipeline_mode<synchronous>, transform_indices = @transform_2, window_bounds = array<i64: 8, 1>}, {pipeline_mode = #tpu.pipeline_mode<synchronous>, transform_indices = @transform_3, window_bounds = array<i64: 8, 8>}, {transform_indices = @transform_4, window_bounds = array<i64: 8, 256>}]} {
    %c0 = arith.constant 0 : index
    %c0_0 = arith.constant 0 : index
    %0 = vector.load %arg2[%c0, %c0_0] : memref<8x36xf32, #tpu.memory_space<vmem>>, vector<8x36xf32>
    %c0_1 = arith.constant 0 : index
    %c0_2 = arith.constant 0 : index
    %1 = vector.load %arg1[%c0_1, %c0_2] : memref<36x256xf32, #tpu.memory_space<vmem>>, vector<36x256xf32>
    %cst = arith.constant dense<0.000000e+00> : vector<8x256xf32>
    %2 = tpu.matmul %0, %1, %cst {dimension_numbers = #tpu.dot_dimension_numbers<[1], [0], [0], [1], [0, 0, 1, 1], [], []>} : vector<8x36xf32>, vector<36x256xf32>, vector<8x256xf32> -> vector<8x256xf32>
    %c0_3 = arith.constant 0 : index
    %c0_4 = arith.constant 0 : index
    %3 = vector.load %arg3[%c0_3, %c0_4] : memref<8x1xf32, #tpu.memory_space<vmem>>, vector<8x1xf32>
    %4 = vector.broadcast %3 : vector<8x1xf32> to vector<8x256xf32>
    %5 = arith.addf %2, %4 : vector<8x256xf32>
    %cst_5 = arith.constant 0.000000e+00 : f32
    %6 = vector.broadcast %cst_5 : f32 to vector<8x256xf32>
    %7 = arith.cmpf oge, %5, %6 : vector<8x256xf32>
    %cst_6 = arith.constant 0.00999999977 : f32
    %8 = vector.broadcast %cst_6 : f32 to vector<8x256xf32>
    %9 = arith.mulf %8, %5 : vector<8x256xf32>
    %10 = arith.select %7, %5, %9 : vector<8x256xi1>, vector<8x256xf32>
    %c0_7 = arith.constant 0 : index
    %c0_8 = arith.constant 0 : index
    %11 = vector.load %arg4[%c0_7, %c0_8] : memref<8x8xf32, #tpu.memory_space<vmem>>, vector<8x8xf32>
    %cst_9 = arith.constant dense<0.000000e+00> : vector<8x256xf32>
    %12 = tpu.matmul %11, %10, %cst_9 {dimension_numbers = #tpu.dot_dimension_numbers<[1], [0], [0], [1], [0, 0, 1, 1], [], []>} : vector<8x8xf32>, vector<8x256xf32>, vector<8x256xf32> -> vector<8x256xf32>
    %c0_10 = arith.constant 0 : index
    %c0_11 = arith.constant 0 : index
    %13 = vector.load %arg5[%c0_10, %c0_11] : memref<8x256xf32, #tpu.memory_space<vmem>>, vector<8x256xf32>
    tpu.vector_store %arg5[%c0_10, %c0_11], %12 {strides = array<i32>} : memref<8x256xf32, #tpu.memory_space<vmem>>, vector<8x256xf32>,
    return
  }
  func.func @transform_0(%arg0: i32) -> (i32, i32) {
    %c0_i32 = arith.constant 0 : i32
    %c0_i32_0 = arith.constant 0 : i32
    return %c0_i32, %arg0 : i32, i32
  }
  func.func @transform_1(%arg0: i32) -> (i32, i32) {
    %c0_i32 = arith.constant 0 : i32
    %c0_i32_0 = arith.constant 0 : i32
    %c0_i32_1 = arith.constant 0 : i32
    return %c0_i32, %c0_i32_0 : i32, i32
  }
  func.func @transform_2(%arg0: i32) -> (i32, i32) {
    %c0_i32 = arith.constant 0 : i32
    %c0_i32_0 = arith.constant 0 : i32
    %c0_i32_1 = arith.constant 0 : i32
    return %c0_i32, %c0_i32_0 : i32, i32
  }
  func.func @transform_3(%arg0: i32) -> (i32, i32) {
    %c0_i32 = arith.constant 0 : i32
    %c0_i32_0 = arith.constant 0 : i32
    %c0_i32_1 = arith.constant 0 : i32
    return %c0_i32, %c0_i32_0 : i32, i32
  }
  func.func @transform_4(%arg0: i32) -> (i32, i32) {
    %c0_i32 = arith.constant 0 : i32
    %c0_i32_0 = arith.constant 0 : i32
    return %c0_i32, %arg0 : i32, i32
  }
}

</mosaic_0001>

<bundles_post_ra>
// kernel: tpu_custom_call.1
= control target key start
LH: loop header
LB: loop body
LE: loop exit
PB: predicated region body
PF: predicated region fallthrough
CT: control target
= control target key end

     0   :  { %9 = vsyncpa [#allocation3], 0  ;;  %s862_s0 = inlined_call_operand.hbm [shape: f32[36,512], index: 0, kind: input, shape index: {}]   ;;  %s863_s1 = inlined_call_operand.vmem [shape: f32[8,36], index: 1, kind: input, shape index: {}]   ;;  %s864_s2 = inlined_call_operand.vmem [shape: f32[8,1], index: 2, kind: input, shape index: {}]   ;;  %s865_s3 = inlined_call_operand.vmem [shape: f32[8,8], index: 3, kind: input, shape index: {}]   ;;  %s866_s4 = inlined_call_operand.hbm [shape: f32[8,512], index: 4, kind: output, shape index: {}]  }
   0x1   :  { %11 = vsyncpa [#allocation3 + $0x1], 0 }
   0x2   :  { %12 = vsyncpa [#allocation4], 0 }
   0x3   :  { %14 = vsyncpa [#allocation4 + $0x1], 0  ;;  %s696_s15 = smov 0   ;;  %s698_s16 = smov 0  }
   0x4   :  { %s700_s17 = smov 0   ;;  %s702_s18 = smov 0  }
   0x5 LB: > { %s717_s19 = sadd.s32 4294967295, %s662_s18   ;;  %s486_s20 = sadd.s32 4294967294, %s662_s18   ;;  %s662_s18 = sphi %s702_s18, %s879_s18   ;;  %s658_s17 = sphi %s700_s17, %s878_s17   ;;  %s654_s16 = sphi %s698_s16, %s877_s16   ;;  %s650_s15 = sphi %s696_s15, %s876_s15  }
   0x6   : > { %s721_s21 = sadd.s32 1, %s662_s18   ;;  %s27_s22 = sadd.s32 1, %s658_s17 }
   0x7   : > { %s24_s23 = ssub.s32 %s662_s18, %s721_s21  ;;  %p34_p0 = scmp.ne.s32.totalorder %s658_s17, %s654_s16 }
   0x8   : > { %p25_p1 = scmp.eq.s32.totalorder %s24_s23, 0  ;;  %p35_p2 = scmp.eq.s32.totalorder %s662_s18, 0 }
   0x9   : > { %p40_p3 = scmp.ne.s32.totalorder %s654_s16, %s650_s15  ;;  %p41_p4 = scmp.eq.s32.totalorder %s717_s19, 0 }
   0xa   : > { %s733_s24 = scalar_select %p25_p1, %s658_s17, %s27_s22  }
   0xb   : > { %p36_p5 = por %p35_p2, %p34_p0  ;;  %p735_p6 = por %p41_p4, %p40_p3 }
   0xc   : > { %p127_p7 = scmp.eq.s32.totalorder %s717_s19, 1  ;;  %p133_p8 = scmp.eq.s32.totalorder %s486_s20, 1 }
   0xd   : > { %p526_p10 = scmp.lt.s32.totalorder %s662_s18, 2  ;;  %s162_s28 = sand.u32 1, %s658_s17  }
   0xe   : > { %p742_p11 = por %p127_p7, %p34_p0  ;;  %p746_p12 = por %p133_p8, %p40_p3 }
   0xf   : > { %s502_s29 = sshll.u32 %s662_s18, 8  ;;  %s512_s30 = smul.u32 80, %s162_s28 }
  0x10   : > { %s869_s26 = scalar_select %p742_p11, 1, 0 }
  0x11   : > { %s870_s27 = scalar_select %p746_p12, 1, 0 }
  0x12   : > { %s755_s7 = scalar_lea.hbm %s862_s0, %s502_s29  ;;  %p757_p13 = pnand %p526_p10, %p36_p5 }
  0x13   : > { %s166_s9 = scalar_lea.vmem [#allocation2], %s512_s30  ;;  %s764_s11 = scalar_lea.sflag [#allocation3], %s162_s28 }
  0x14   : > { %s173_s10 = sshll.u32 %s166_s9, 4  ;;  %s566_s12 = scalar_lea.hbm %s755_s7, 1280  ;;  %s761_s10 = int_to_ptr.vmem [resolvable:$true] %s173_s10 }
  0x15   : > { %p567_p1 = scmp.ne.s32.totalorder %s755_s7, %s566_s12  ;;  %p568_p2 = pneg %p757_p13 }
  0x16   : > { %s571_s20 = scalar_lea.hbm %s862_s0, 2560  ;;  %p572_p5 = scmp.lt.u32.totalorder %s755_s7, %s862_s0 }
  0x17   : > { %p569_p3 = pnand %p568_p2, %p567_p1  ;;  %p573_p7 = scmp.lt.u32.totalorder %s571_s20, %s566_s12 }
  0x18   : > { %p575_p10 = scmp.lt.u32.totalorder %s566_s12, %s755_s7 }
  0x19   : > { %p570_p4 = pneg %p569_p3  ;;  %p574_p8 = por %p573_p7, %p572_p5 }
  0x1b   : > { %p576_p9 = por %p575_p10, %p574_p8 }
  0x1d   : > { %p577_p0 = pnand %p576_p9, %p570_p4 }
  0x1f   : > { %580 = shalt.err (!%p577_p0)
}
  0x20   : > { %s581_s28 = scalar_lea.vmem %s761_s10, 1280  ;;  %s664_s29 = smov [#allocation2]  }
  0x21   : > { %p582_p1 = scmp.ne.s32.totalorder %s761_s10, %s581_s28  ;;  %s586_s30 = sshll.u32 %s664_s29, 4  ;;  %s587_s30 = int_to_ptr.vmem [resolvable:$false] %s586_s30 }
  0x22   : > { %s588_s5 = scalar_lea.vmem %s587_s30, 2560  ;;  %p589_p11 = scmp.lt.s32.totalorder %s761_s10, %s587_s30 }
  0x23   : > { %p584_p3 = pnand %p582_p1, %p568_p2  ;;  %p590_p5 = scmp.lt.s32.totalorder %s588_s5, %s581_s28 }
  0x25   : > { %p585_p12 = pneg %p584_p3  ;;  %p591_p7 = por %p590_p5, %p589_p11 }
  0x27   : > { %p592_p8 = pnand %p591_p7, %p585_p12 }
  0x29   : > { %595 = shalt.err (!%p592_p8)
}
  0x2a   : > { %s665_s6 = smov 512   ;;  %s666_s9 = smov 256  }
  0x2b   : > { %s667_s12 = smov 16   ;;  %p181_p9 = scmp.lt.s32.totalorder %s662_s18, 3 }
  0x2c   : > { %521 = dma.hbm_to_vmem [thread:$0]  (!%p757_p13), %s755_s7, 1280, %s761_s10, %s764_s11, %s665_s6, %s666_s9, %s667_s12  }
  0x2d   : > { %p872_p0 = scmp.ge.s32.totalorder %s662_s18, 1 }
  0x2f   : > { %p182_p2 = pnand %p872_p0, %p181_p9 }
  0x30   : > { %s796_s13 = sand.u32 (!%p182_p2), 1, %s654_s16  }
  0x31   : > { %185 = sbr.rel (%p182_p2) target bundleno = 517 (0x205), region = 36  ;;  %s188_s20 = scalar_lea.sflag (!%p182_p2), [#allocation3], %s796_s13 }
  0x32   : > { %s513_s14 = smul.u32 (!%p182_p2), 80, %s796_s13 }
  0x34   : > { %s191_s22 = scalar_lea.vmem (!%p182_p2), [#allocation2], %s513_s14 }
  0x38   : > { %641 = dma.done.wait (%p735_p6), %s188_s20, 1280  }
  0x39   : > { %643 = vsyncadd (%p735_p6), %s188_s20, 4294966016  ;;  %v668_v0 = vmov 0.0   ;;  %v669_v1 = vmov 0   ;;  %v220_v2 = vld [vmem:[%s191_s22 + $0x8] sm:$0xff]  ;;  %v222_v3 = vld [vmem:[%s191_s22 + $0x18] sm:$0xff]  ;;  %vm239_vm0 = vcmask 1043456  }
  0x3a   : > { %310 = vmatprep.mubr.f32.mxu0 %v668_v0  ;;  %565 = vset.pattern.permute.xlu0 %v669_v1  ;;  %v219_v4 = vld [vmem:[%s191_s22] sm:$0xff]  ;;  %v504_v5 = vpack.c.bf16 %v222_v3, %v220_v2  ;;  %v221_v6 = vld [vmem:[%s191_s22 + $0x10] sm:$0xff]  ;;  %v224_v7 = vld [vmem:[%s191_s22 + $0x28] sm:$0xff]  ;;  %vm235_vm1 = vcmask 293888   ;;  %vm324_vm4 = vcmask 64512   ;;  %s492_s28 = sshll.u32 %s796_s13, 4 }
  0x3b   : > { %392 = vmatprep.mubr.f32.mxu1 %v668_v0  ;;  %v226_v8 = vld [vmem:[%s191_s22 + $0x38] sm:$0xff]  ;;  %v506_v9 = vpack.c.bf16 %v221_v6, %v219_v4  ;;  %v223_v11 = vld [vmem:[%s191_s22 + $0x20] sm:$0xff]  ;;  %v225_v12 = vld [vmem:[%s191_s22 + $0x30] sm:$0xff]  ;;  %s215_s29 = scalar_lea.vmem [#allocation5], %s492_s28  ;;  %s503_s5 = sshll.u32 %s717_s19, 8 }
  0x3c   : > { %v508_v10 = vpack.c.bf16 %v226_v8, %v224_v7  ;;  %505 = vmatprep.subr.bf16.mxu0 %v504_v5  ;;  %v229_v13 = vld [vmem:[%s864_s2] sm:$0xff]  ;;  %v510_v14 = vpack.c.bf16 %v225_v12, %v223_v11  ;;  %v228_v15 = vld [vmem:[%s191_s22 + $0x48] sm:$0xf]  ;;  %s416_s30 = sshll.u32 %s215_s29, 4  ;;  %s820_s12 = scalar_lea.hbm %s866_s4, %s503_s5  ;;  %s815_s30 = int_to_ptr.vmem [resolvable:$true] %s416_s30 }
  0x3d   : > { %507 = vmatpush1.bf16.msra.mxu0 %v506_v9  ;;  %232 = vperm.xlu0 %565, %v229_v13   ;;  %v227_v16 = vld [vmem:[%s191_s22 + $0x40] sm:$0xf]  ;;  %s402_s14 = scalar_lea.sflag [#allocation4], %s796_s13  ;;  %s596_s20 = scalar_lea.vmem %s815_s30, 256 }
  0x3e   : > { %509 = vmatprep.subr.bf16.mxu0 %v508_v10  ;;  %v218_v17 = vld [vmem:[%s863_s1] sm:$0xff]  ;;  %p597_p6 = scmp.ne.s32.totalorder %s815_s30, %s596_s20  ;;  %p873_p11 = scmp.ne.s32.totalorder %s869_s26, 0 }
  0x3f   : > { %v323_v26 = vld [vmem:[%s865_s3] sm:$0xff]  ;;  %s670_s19 = smov [#allocation5]  }
  0x40   : > { %p598_p12 = pnand %p597_p6, %p873_p11  ;;  %s600_s22 = sshll.u32 %s670_s19, 4  ;;  %s601_s22 = int_to_ptr.vmem [resolvable:$false] %s600_s22 }
  0x41   : > { %511 = vmatpush1.bf16.msra.mxu0 %v510_v14  ;;  %s602_s7 = scalar_lea.vmem %s601_s22, 512  ;;  %p603_p4 = scmp.lt.s32.totalorder %s815_s30, %s601_s22 }
  0x42   : > { %493 = vmatprep.subr.msk.mxu0 %vm239_vm0, %v228_v15  ;;  %p599_p13 = pneg %p598_p12  ;;  %p604_p10 = scmp.lt.s32.totalorder %s602_s7, %s596_s20 }
  0x44   : > { %p605_p1 = por %p604_p10, %p603_p4 }
  0x45   : > { %494 = vmatpush1.msk.msra.mxu0 %vm239_vm0, %v227_v16 }
  0x46   : > { %495 = vmatmul.mubr.msk.f32.vlgmr.msra.gmra.mrb[0].mxu0 %vm235_vm1, %v218_v17  ;;  %p606_p3 = pnand %p605_p1, %p599_p13 }
  0xbc   : > { %v233_v18 = vpop.permute.xlu0 %232 }
 0x119   : > { %v312_v19 = vpop.f32.mrb[0].mxu0 }
 0x11a   : > { %v313_v20 = vadd.f32 %v312_v19, %v233_v18  ;;  %v314_v21 = vpop.f32.mrb[1].mxu0 }
 0x11b   : > { %v315_v22 = vadd.f32 %v314_v21, %v233_v18 }
 0x11c   : > { %v319_v23 = vmul.f32 0.01, %v313_v20  ;;  %vm317_vm3 = vcmp.ge.f32.partialorder %v313_v20, 0.0 }
 0x11d   : > { %vm318_vm2 = vcmp.ge.f32.partialorder %v315_v22, 0.0  ;;  %v320_v24 = vmul.f32 0.01, %v315_v22 }
 0x11e   : > { %v321_v27 = vsel %vm317_vm3, %v313_v20, %v319_v23 }
 0x11f   : > { %v322_v25 = vsel %vm318_vm2, %v315_v22, %v320_v24 }
 0x120   : > { %328 = vmatprep.subr.mxu1 %v322_v25 }
 0x121   : > { %329 = vmatpush1.msra.mxu1 %v321_v27 }
 0x122   : > { %496 = vmatmul.mubr.msk.f32.vlgmr.msra.gmra.mrb[0].mxu1 %vm324_vm4, %v323_v26 }
 0x1f5   : > { %v394_v28 = vpop.f32.mrb[0].mxu1 }
 0x1f6   : > { %399 = vst [vmem:[%s215_s29] sm:$0xff] %v394_v28  ;;  %v396_v29 = vpop.f32.mrb[1].mxu1 }
 0x1f7   : > { %400 = vst [vmem:[%s215_s29 + $0x8] sm:$0xff] %v396_v29 }
 0x1f8   : > { %609 = shalt.err (!%p606_p3)
}
 0x1f9   : > { %s610_s13 = scalar_lea.hbm %s820_s12, 256  ;;  %s614_s10 = scalar_lea.hbm %s866_s4, 512 }
 0x1fa   : > { %p611_p5 = scmp.ne.s32.totalorder %s820_s12, %s610_s13  ;;  %p615_p9 = scmp.lt.u32.totalorder %s820_s12, %s866_s4 }
 0x1fb   : > { %p616_p0 = scmp.lt.u32.totalorder %s614_s10, %s610_s13  ;;  %p618_p6 = scmp.lt.u32.totalorder %s610_s13, %s820_s12 }
 0x1fc   : > { %p612_p7 = pnand %p611_p5, %p873_p11 }
 0x1fd   : > { %p617_p2 = por %p616_p0, %p615_p9 }
 0x1fe   : > { %p613_p8 = pneg %p612_p7 }
 0x1ff   : > { %p619_p12 = por %p618_p6, %p617_p2 }
 0x201   : > { %p620_p13 = pnand %p619_p12, %p613_p8 }
 0x203   : > { %623 = shalt.err (!%p620_p13)
}
 0x204   : > { %516 = dma.vmem_to_hbm [thread:$0]  (%p873_p11), %s815_s30, 256, %s820_s12, %s402_s14  }
 0x205 PF: > { %s428_s28 = sand.u32 1, %s650_s15   ;;  %p874_p4 = scmp.ne.s32.totalorder %s870_s27, 0 }
 0x206   : > { %p875_p10 = scmp.ge.s32.totalorder %s662_s18, 2  ;;  %s429_s29 = scalar_lea.sflag [#allocation4], %s428_s28 }
 0x208   : > { %p523_p1 = pnand %p875_p10, %p874_p4 }
 0x20a   : > { %645 = dma.done.wait (!%p523_p1), %s429_s29, 256  }
 0x20b   : > { %647 = vsyncadd (!%p523_p1), %s429_s29, 4294967040  ;;  %p17_p3 = scmp.ge.s32.totalorder %s721_s21, 4   ;;  %s876_s15 = smov %s654_s16 }
 0x20c   : > { %s877_s16 = smov %s658_s17  ;;  %s878_s17 = smov %s733_s24 }
 0x20d   : > { %s879_s18 = smov %s721_s21  ;;  %19 = sbr.rel (!%p17_p3) target bundleno = 5 (0x5), region = 81 }
 0x214   :  { %434 = vsyncpa [#allocation3], 1 }
 0x215   :  { %436 = vsyncpa [#allocation3 + $0x1], 1 }
 0x216   :  { %437 = vsyncpa [#allocation4], 1 }
 0x217   :  { %439 = vsyncpa [#allocation4 + $0x1], 1 }

</bundles_post_ra>
